<compile_context>
chip_gen: v7x
topology: tpu7x:2x2x1
jax: 0.10.0
libtpu: 0.0.40
codegen_flags: <defaults>
</compile_context>

<pallas_src>
import jax
import jax.numpy as jnp
from jax.experimental import pallas as pl
from jax.experimental.pallas import tpu as pltpu

# logical / lane-padded dimensions
D_IN = 784                       # input features (28*28), used as full lane dim
D_H1 = 256
D_H2 = 128
D_H3, D_H3_P = 64, 128           # hidden 64 -> padded to 128 lanes
D_OUT, D_OUT_P = 10, 128         # classes 10 -> padded to 128 lanes
NEG_INF_BIAS = -1e30             # padded-class bias -> exp() == 0 exactly


def _round_up(n, m):
    return (n + m - 1) // m * m


def _choose_tile_b(batch, max_tile):
    """MXU-aligned batch tile; aims for >=2 grid steps on mid/large batches
    (v7x 2-TC split) while never picking a tile much larger than the batch."""
    max_tile = max(16, _round_up(int(max_tile), 16))
    t = min(max_tile, _round_up(pl.cdiv(batch, 2), 128))   # >=2 steps when big
    t = min(t, _round_up(batch, 16))                       # don't overshoot B
    return max(16, int(t))


def mlp_kernel(x_ref, w1_ref, b1_ref, w2_ref, b2_ref, w3_ref, b3_ref,
               w4_ref, b4_ref, o_ref):
    # TODO(synk): Dropout(p=0.1) only affects training; inference forward is identity.
    x = x_ref[...].astype(jnp.bfloat16)                            # cast in VMEM, [tb, 784]

    h1 = jnp.dot(x, w1_ref[...], preferred_element_type=jnp.float32) + b1_ref[...]
    h1 = jnp.maximum(h1, 0.0).astype(jnp.bfloat16)                 # [tb, 256]

    h2 = jnp.dot(h1, w2_ref[...], preferred_element_type=jnp.float32) + b2_ref[...]
    h2 = jnp.maximum(h2, 0.0).astype(jnp.bfloat16)                 # [tb, 128]

    h3 = jnp.dot(h2, w3_ref[...], preferred_element_type=jnp.float32) + b3_ref[...]
    h3 = jnp.maximum(h3, 0.0).astype(jnp.bfloat16)                 # [tb, 128] (cols >=64: exactly 0)

    logits = jnp.dot(h3, w4_ref[...], preferred_element_type=jnp.float32) + b4_ref[...]
    # padded classes carry bias -1e30 -> they never win the max and exp()==0,
    # so log_softmax over 128 lanes equals log_softmax over the real 10 classes.
    m = jnp.max(logits, axis=-1, keepdims=True)
    shifted = logits - m
    lse = jnp.log(jnp.sum(jnp.exp(shifted), axis=-1, keepdims=True))
    o_ref[...] = shifted - lse                                     # f32 [tb, 128]


def prepare_params(params):
    """Lane-pad the last two layers, cast weights to bf16 (biases stay f32)."""
    w1, b1, w2, b2, w3, b3, w4, b4 = params
    w1p = w1.astype(jnp.bfloat16)                                  # [784, 256] (no HBM pad)
    w2p = w2.astype(jnp.bfloat16)                                  # [256, 128]
    w3p = jnp.zeros((D_H2, D_H3_P), jnp.float32).at[:, :D_H3].set(w3).astype(jnp.bfloat16)
    b3p = jnp.zeros((1, D_H3_P), jnp.float32).at[:, :D_H3].set(b3)
    w4p = jnp.zeros((D_H3_P, D_OUT_P), jnp.float32).at[:D_H3, :D_OUT].set(w4).astype(jnp.bfloat16)
    b4p = jnp.full((1, D_OUT_P), NEG_INF_BIAS, jnp.float32).at[:, :D_OUT].set(b4)
    return (w1p, b1.astype(jnp.float32),
            w2p, b2.astype(jnp.float32),
            w3p, b3p,
            w4p, b4p)


def network_forward(x, params, *, tile_b=1024):
    """x: [B, 1, 28, 28] or [B, 784]. Returns log-probs [B, 10] (float32)."""
    B = x.shape[0]
    x2d = x.reshape(B, -1)                                         # x.view(B, -1): no HBM copy
    assert x2d.shape[1] == D_IN
    if x2d.dtype not in (jnp.float32, jnp.bfloat16):
        x2d = x2d.astype(jnp.float32)

    tb = _choose_tile_b(B, tile_b)
    grid = (pl.cdiv(B, tb),)                                       # ragged last block handled by Pallas
    vmem_limit = (32 if tb <= 1024 else 48) * 1024 * 1024

    kp = prepare_params(params)

    def full(a):
        # Whole-array block with a constant index_map: stays VMEM-resident,
        # not re-DMA'd per grid step.
        return pl.BlockSpec(a.shape, lambda i: (0,) * a.ndim)

    out = pl.pallas_call(
        mlp_kernel,
        out_shape=jax.ShapeDtypeStruct((B, D_OUT_P), jnp.float32),
        grid_spec=pltpu.PrefetchScalarGridSpec(
            num_scalar_prefetch=0,
            grid=grid,
            in_specs=[
                pl.BlockSpec((tb, D_IN), lambda i: (i, 0)),        # x straight from HBM
                full(kp[0]), full(kp[1]),
                full(kp[2]), full(kp[3]),
                full(kp[4]), full(kp[5]),
                full(kp[6]), full(kp[7]),
            ],
            out_specs=pl.BlockSpec((tb, D_OUT_P), lambda i: (i, 0)),
        ),
        compiler_params=pltpu.CompilerParams(
            dimension_semantics=("parallel",),
            vmem_limit_bytes=vmem_limit),
    )(x2d, *kp)

    return out[:, :D_OUT]


def init_params(key):
    """Deterministic init matching nn.Linear shapes, stored as [in, out]."""
    dims = [(784, 256), (256, 128), (128, 64), (64, 10)]
    params = []
    for i, (din, dout) in enumerate(dims):
        kw, kb = jax.random.split(jax.random.fold_in(key, i))
        bound = 1.0 / jnp.sqrt(din)
        w = jax.random.uniform(kw, (din, dout), jnp.float32, -bound, bound)
        b = jax.random.uniform(kb, (1, dout), jnp.float32, -bound, bound)
        params += [w, b]
    return tuple(params)


def reference_forward(x, params):
    """Pure-JAX reference emulating the kernel's bf16-weight / f32-accum math."""
    w1, b1, w2, b2, w3, b3, w4, b4 = params

    def layer(h, w, b, relu):
        y = jnp.dot(h.astype(jnp.bfloat16), w.astype(jnp.bfloat16),
                    preferred_element_type=jnp.float32) + b
        return jax.nn.relu(y) if relu else y

    h = x.reshape(x.shape[0], -1)
    h = layer(h, w1, b1, True)
    h = layer(h, w2, b2, True)
    h = layer(h, w3, b3, True)
    logits = layer(h, w4, b4, False)
    return jax.nn.log_softmax(logits, axis=1)


if __name__ == "__main__":
    key = jax.random.PRNGKey(0)
    kx, kp = jax.random.split(key)

    # Small MNIST-like batch [B, 1, 28, 28]; B=20 deliberately not a multiple of
    # any tile size to exercise the ragged last block.
    B = 20
    x = jax.random.normal(kx, (B, 1, 28, 28), jnp.float32)
    params = init_params(kp)
    ref = reference_forward(x, params)

    # Default heuristic path (single oversized-but-aligned tile for tiny B).
    out = jax.block_until_ready(network_forward(x, params))
    assert out.shape == (B, 10)
    assert bool(jnp.all(jnp.isfinite(out)))
    assert jnp.allclose(out, ref, atol=1e-3, rtol=1e-3)

    # Explicit small tile -> 2-step parallel grid with a ragged last block.
    out2 = jax.block_until_ready(network_forward(x, params, tile_b=16))
    assert out2.shape == (B, 10)
    assert jnp.allclose(out2, ref, atol=1e-3, rtol=1e-3)

    print("KERNEL_OK")
</pallas_src>

<mosaic_0001>
module attributes {stable_mosaic.version = 11 : i64} {
  func.func @mlp_kernel(%arg0: i32, %arg1: memref<32x784xf32, #tpu.memory_space<vmem>>, %arg2: memref<784x256xbf16, #tpu.memory_space<vmem>>, %arg3: memref<1x256xf32, #tpu.memory_space<vmem>>, %arg4: memref<256x128xbf16, #tpu.memory_space<vmem>>, %arg5: memref<1x128xf32, #tpu.memory_space<vmem>>, %arg6: memref<128x128xbf16, #tpu.memory_space<vmem>>, %arg7: memref<1x128xf32, #tpu.memory_space<vmem>>, %arg8: memref<128x128xbf16, #tpu.memory_space<vmem>>, %arg9: memref<1x128xf32, #tpu.memory_space<vmem>>, %arg10: memref<32x128xf32, #tpu.memory_space<vmem>>) attributes {dimension_semantics = [#tpu.dimension_semantics<parallel>], iteration_bounds = array<i64: 1>, scalar_prefetch = 0 : i64, scratch_operands = 0 : i64, tpu.core_type = #tpu.core_type<tc>, window_params = [{transform_indices = @transform_0, window_bounds = array<i64: 32, 784>}, {pipeline_mode = #tpu.pipeline_mode<synchronous>, transform_indices = @transform_1, window_bounds = array<i64: 784, 256>}, {pipeline_mode = #tpu.pipeline_mode<synchronous>, transform_indices = @transform_2, window_bounds = array<i64: 1, 256>}, {pipeline_mode = #tpu.pipeline_mode<synchronous>, transform_indices = @transform_3, window_bounds = array<i64: 256, 128>}, {pipeline_mode = #tpu.pipeline_mode<synchronous>, transform_indices = @transform_4, window_bounds = array<i64: 1, 128>}, {pipeline_mode = #tpu.pipeline_mode<synchronous>, transform_indices = @transform_5, window_bounds = array<i64: 128, 128>}, {pipeline_mode = #tpu.pipeline_mode<synchronous>, transform_indices = @transform_6, window_bounds = array<i64: 1, 128>}, {pipeline_mode = #tpu.pipeline_mode<synchronous>, transform_indices = @transform_7, window_bounds = array<i64: 128, 128>}, {pipeline_mode = #tpu.pipeline_mode<synchronous>, transform_indices = @transform_8, window_bounds = array<i64: 1, 128>}, {transform_indices = @transform_9, window_bounds = array<i64: 32, 128>}]} {
    %c0 = arith.constant 0 : index
    %c0_0 = arith.constant 0 : index
    %0 = vector.load %arg1[%c0, %c0_0] : memref<32x784xf32, #tpu.memory_space<vmem>>, vector<32x784xf32>
    %1 = arith.truncf %0 : vector<32x784xf32> to vector<32x784xbf16>
    %c0_1 = arith.constant 0 : index
    %c0_2 = arith.constant 0 : index
    %2 = vector.load %arg2[%c0_1, %c0_2] : memref<784x256xbf16, #tpu.memory_space<vmem>>, vector<784x256xbf16>
    %cst = arith.constant dense<0.000000e+00> : vector<32x256xf32>
    %3 = tpu.matmul %1, %2, %cst {dimension_numbers = #tpu.dot_dimension_numbers<[1], [0], [0], [1], [0, 0, 1, 1], [], []>} : vector<32x784xbf16>, vector<784x256xbf16>, vector<32x256xf32> -> vector<32x256xf32>
    %c0_3 = arith.constant 0 : index
    %c0_4 = arith.constant 0 : index
    %4 = vector.load %arg3[%c0_3, %c0_4] : memref<1x256xf32, #tpu.memory_space<vmem>>, vector<1x256xf32>
    %5 = vector.broadcast %4 : vector<1x256xf32> to vector<32x256xf32>
    %6 = arith.addf %3, %5 : vector<32x256xf32>
    %cst_5 = arith.constant 0.000000e+00 : f32
    %7 = vector.broadcast %cst_5 : f32 to vector<32x256xf32>
    %8 = arith.maximumf %6, %7 : vector<32x256xf32>
    %9 = arith.truncf %8 : vector<32x256xf32> to vector<32x256xbf16>
    %c0_6 = arith.constant 0 : index
    %c0_7 = arith.constant 0 : index
    %10 = vector.load %arg4[%c0_6, %c0_7] : memref<256x128xbf16, #tpu.memory_space<vmem>>, vector<256x128xbf16>
    %cst_8 = arith.constant dense<0.000000e+00> : vector<32x128xf32>
    %11 = tpu.matmul %9, %10, %cst_8 {dimension_numbers = #tpu.dot_dimension_numbers<[1], [0], [0], [1], [0, 0, 1, 1], [], []>} : vector<32x256xbf16>, vector<256x128xbf16>, vector<32x128xf32> -> vector<32x128xf32>
    %c0_9 = arith.constant 0 : index
    %c0_10 = arith.constant 0 : index
    %12 = vector.load %arg5[%c0_9, %c0_10] : memref<1x128xf32, #tpu.memory_space<vmem>>, vector<1x128xf32>
    %13 = vector.broadcast %12 : vector<1x128xf32> to vector<32x128xf32>
    %14 = arith.addf %11, %13 : vector<32x128xf32>
    %cst_11 = arith.constant 0.000000e+00 : f32
    %15 = vector.broadcast %cst_11 : f32 to vector<32x128xf32>
    %16 = arith.maximumf %14, %15 : vector<32x128xf32>
    %17 = arith.truncf %16 : vector<32x128xf32> to vector<32x128xbf16>
    %c0_12 = arith.constant 0 : index
    %c0_13 = arith.constant 0 : index
    %18 = vector.load %arg6[%c0_12, %c0_13] : memref<128x128xbf16, #tpu.memory_space<vmem>>, vector<128x128xbf16>
    %cst_14 = arith.constant dense<0.000000e+00> : vector<32x128xf32>
    %19 = tpu.matmul %17, %18, %cst_14 {dimension_numbers = #tpu.dot_dimension_numbers<[1], [0], [0], [1], [0, 0, 1, 1], [], []>} : vector<32x128xbf16>, vector<128x128xbf16>, vector<32x128xf32> -> vector<32x128xf32>
    %c0_15 = arith.constant 0 : index
    %c0_16 = arith.constant 0 : index
    %20 = vector.load %arg7[%c0_15, %c0_16] : memref<1x128xf32, #tpu.memory_space<vmem>>, vector<1x128xf32>
    %21 = vector.broadcast %20 : vector<1x128xf32> to vector<32x128xf32>
    %22 = arith.addf %19, %21 : vector<32x128xf32>
    %cst_17 = arith.constant 0.000000e+00 : f32
    %23 = vector.broadcast %cst_17 : f32 to vector<32x128xf32>
    %24 = arith.maximumf %22, %23 : vector<32x128xf32>
    %25 = arith.truncf %24 : vector<32x128xf32> to vector<32x128xbf16>
    %c0_18 = arith.constant 0 : index
    %c0_19 = arith.constant 0 : index
    %26 = vector.load %arg8[%c0_18, %c0_19] : memref<128x128xbf16, #tpu.memory_space<vmem>>, vector<128x128xbf16>
    %cst_20 = arith.constant dense<0.000000e+00> : vector<32x128xf32>
    %27 = tpu.matmul %25, %26, %cst_20 {dimension_numbers = #tpu.dot_dimension_numbers<[1], [0], [0], [1], [0, 0, 1, 1], [], []>} : vector<32x128xbf16>, vector<128x128xbf16>, vector<32x128xf32> -> vector<32x128xf32>
    %c0_21 = arith.constant 0 : index
    %c0_22 = arith.constant 0 : index
    %28 = vector.load %arg9[%c0_21, %c0_22] : memref<1x128xf32, #tpu.memory_space<vmem>>, vector<1x128xf32>
    %29 = vector.broadcast %28 : vector<1x128xf32> to vector<32x128xf32>
    %30 = arith.addf %27, %29 : vector<32x128xf32>
    %cst_23 = arith.constant dense<0xFF800000> : vector<32xf32>
    %31 = vector.multi_reduction <maximumf>, %30, %cst_23 [1] : vector<32x128xf32> to vector<32xf32>
    %32 = vector.shape_cast %31 : vector<32xf32> to vector<32x1xf32>
    %33 = vector.broadcast %32 : vector<32x1xf32> to vector<32x128xf32>
    %34 = arith.subf %30, %33 : vector<32x128xf32>
    %35 = math.exp %34 : vector<32x128xf32>
    %cst_24 = arith.constant dense<0.000000e+00> : vector<32xf32>
    %36 = vector.multi_reduction <add>, %35, %cst_24 [1] : vector<32x128xf32> to vector<32xf32>
    %37 = vector.shape_cast %36 : vector<32xf32> to vector<32x1xf32>
    %38 = math.log %37 : vector<32x1xf32>
    %39 = vector.broadcast %38 : vector<32x1xf32> to vector<32x128xf32>
    %40 = arith.subf %34, %39 : vector<32x128xf32>
    %c0_25 = arith.constant 0 : index
    %c0_26 = arith.constant 0 : index
    %41 = vector.load %arg10[%c0_25, %c0_26] : memref<32x128xf32, #tpu.memory_space<vmem>>, vector<32x128xf32>
    tpu.vector_store %arg10[%c0_25, %c0_26], %40 {strides = array<i32>} : memref<32x128xf32, #tpu.memory_space<vmem>>, vector<32x128xf32>,
    return
  }
  func.func @transform_0(%arg0: i32) -> (i32, i32) {
    %c0_i32 = arith.constant 0 : i32
    %c0_i32_0 = arith.constant 0 : i32
    return %arg0, %c0_i32 : i32, i32
  }
  func.func @transform_1(%arg0: i32) -> (i32, i32) {
    %c0_i32 = arith.constant 0 : i32
    %c0_i32_0 = arith.constant 0 : i32
    %c0_i32_1 = arith.constant 0 : i32
    return %c0_i32, %c0_i32_0 : i32, i32
  }
  func.func @transform_2(%arg0: i32) -> (i32, i32) {
    %c0_i32 = arith.constant 0 : i32
    %c0_i32_0 = arith.constant 0 : i32
    %c0_i32_1 = arith.constant 0 : i32
    return %c0_i32, %c0_i32_0 : i32, i32
  }
  func.func @transform_3(%arg0: i32) -> (i32, i32) {
    %c0_i32 = arith.constant 0 : i32
    %c0_i32_0 = arith.constant 0 : i32
    %c0_i32_1 = arith.constant 0 : i32
    return %c0_i32, %c0_i32_0 : i32, i32
  }
  func.func @transform_4(%arg0: i32) -> (i32, i32) {
    %c0_i32 = arith.constant 0 : i32
    %c0_i32_0 = arith.constant 0 : i32
    %c0_i32_1 = arith.constant 0 : i32
    return %c0_i32, %c0_i32_0 : i32, i32
  }
  func.func @transform_5(%arg0: i32) -> (i32, i32) {
    %c0_i32 = arith.constant 0 : i32
    %c0_i32_0 = arith.constant 0 : i32
    %c0_i32_1 = arith.constant 0 : i32
    return %c0_i32, %c0_i32_0 : i32, i32
  }
  func.func @transform_6(%arg0: i32) -> (i32, i32) {
    %c0_i32 = arith.constant 0 : i32
    %c0_i32_0 = arith.constant 0 : i32
    %c0_i32_1 = arith.constant 0 : i32
    return %c0_i32, %c0_i32_0 : i32, i32
  }
  func.func @transform_7(%arg0: i32) -> (i32, i32) {
    %c0_i32 = arith.constant 0 : i32
    %c0_i32_0 = arith.constant 0 : i32
    %c0_i32_1 = arith.constant 0 : i32
    return %c0_i32, %c0_i32_0 : i32, i32
  }
  func.func @transform_8(%arg0: i32) -> (i32, i32) {
    %c0_i32 = arith.constant 0 : i32
    %c0_i32_0 = arith.constant 0 : i32
    %c0_i32_1 = arith.constant 0 : i32
    return %c0_i32, %c0_i32_0 : i32, i32
  }
  func.func @transform_9(%arg0: i32) -> (i32, i32) {
    %c0_i32 = arith.constant 0 : i32
    %c0_i32_0 = arith.constant 0 : i32
    return %arg0, %c0_i32 : i32, i32
  }
}

</mosaic_0001>

<bundles_post_ra>
// kernel: tpu_custom_call.1
= control target key start
LH: loop header
LB: loop body
LE: loop exit
PB: predicated region body
PF: predicated region fallthrough
CT: control target
= control target key end

     0   :  { %14 = vsyncpa [#allocation3], 0  ;;  %s2239_s0 = inlined_call_operand.hbm [shape: f32[20,784], index: 0, kind: input, shape index: {}]   ;;  %s2240_s1 = inlined_call_operand.hbm [shape: bf16[784,256], index: 1, kind: input, shape index: {}]   ;;  %s2241_s2 = inlined_call_operand.vmem [shape: f32[1,256], index: 2, kind: input, shape index: {}]   ;;  %s2242_s3 = inlined_call_operand.hbm [shape: bf16[256,128], index: 3, kind: input, shape index: {}]   ;;  %s2243_s4 = inlined_call_operand.vmem [shape: f32[1,128], index: 4, kind: input, shape index: {}]   ;;  %s2244_s5 = inlined_call_operand.hbm [shape: bf16[128,128], index: 5, kind: input, shape index: {}]   ;;  %s2245_s6 = inlined_call_operand.vmem [shape: f32[1,128], index: 6, kind: input, shape index: {}]   ;;  %s2246_s7 = inlined_call_operand.hbm [shape: bf16[128,128], index: 7, kind: input, shape index: {}]   ;;  %s2247_s8 = inlined_call_operand.vmem [shape: f32[1,128], index: 8, kind: input, shape index: {}]   ;;  %s2248_s9 = inlined_call_operand.hbm [shape: f32[20,128], index: 9, kind: output, shape index: {}]  }
   0x1   :  { %15 = vsyncpa [#allocation6], 0 }
   0x2   :  { %16 = vsyncpa [#allocation9], 0 }
   0x3   :  { %17 = vsyncpa [#allocation4], 0 }
   0x4   :  { %22 = vsyncadd [#allocation3], 896  ;;  %s2077_s30 = smov [#allocation5]   ;;  %s1937_s13 = scalar_lea.hbm %s2240_s1, 12544 }
   0x5   :  { %s35_s10 = sshll.u32 %s2077_s30, 4  ;;  %p1938_p0 = scmp.ne.s32.totalorder %s2240_s1, %s1937_s13  ;;  %s36_s10 = int_to_ptr.vmem [resolvable:$true] %s35_s10 }
   0x6   :  { %p1941_p1 = scmp.lt.u32.totalorder %s1937_s13, %s2240_s1 }
   0x8   :  { %p1943_p2 = pnand %p1941_p1, %p1938_p0 }
   0xa   :  { %1946 = shalt.err (!%p1943_p2)
}
   0xb   :  { %s1947_s18 = scalar_lea.vmem %s36_s10, 12544  ;;  %p1952_p4 = scmp.lt.s32.totalorder %s36_s10, %s36_s10 }
   0xc   :  { %p1948_p3 = scmp.ne.s32.totalorder %s36_s10, %s1947_s18  ;;  %p1953_p5 = scmp.lt.s32.totalorder %s1947_s18, %s1947_s18 }
   0xe   :  { %p1954_p6 = por %p1953_p5, %p1952_p4 }
  0x10   :  { %p1955_p7 = pnand %p1954_p6, %p1948_p3 }
  0x12   :  { %1958 = shalt.err (!%p1955_p7)
}
  0x13   :  { %s2078_s19 = smov 128   ;;  %s2079_s20 = smov 8  }
  0x14   :  { %41 = dma.hbm_to_vmem [thread:$0]  %s2240_s1, 12544, %s36_s10, [#allocation6], %s2078_s19, %s2078_s19, %s2079_s20  }
  0x15   :  { %s2080_s23 = smov [#allocation8]   ;;  %s2081_s25 = smov [#allocation2]  }
  0x16   :  { %s63_s24 = sshll.u32 %s2080_s23, 4  ;;  %s23_s26 = sshll.u32 %s2081_s25, 4  ;;  %s64_s24 = int_to_ptr.vmem [resolvable:$true] %s63_s24  ;;  %s24_s26 = int_to_ptr.vmem [resolvable:$true] %s23_s26 }
  0x17   :  { %s1959_s29 = scalar_lea.hbm %s2244_s5, 1024 }
  0x18   :  { %p1960_p8 = scmp.ne.s32.totalorder %s2244_s5, %s1959_s29  ;;  %p1963_p9 = scmp.lt.u32.totalorder %s1959_s29, %s2244_s5 }
  0x1a   :  { %p1965_p10 = pnand %p1963_p9, %p1960_p8 }
  0x1c   :  { %1968 = shalt.err (!%p1965_p10)
}
  0x1d   :  { %s1969_s1 = scalar_lea.vmem %s64_s24, 1024  ;;  %p1974_p12 = scmp.lt.s32.totalorder %s64_s24, %s64_s24 }
  0x1e   :  { %p1970_p11 = scmp.ne.s32.totalorder %s64_s24, %s1969_s1  ;;  %p1975_p13 = scmp.lt.s32.totalorder %s1969_s1, %s1969_s1 }
  0x20   :  { %p1976_p0 = por %p1975_p13, %p1974_p12 }
  0x22   :  { %p1977_p1 = pnand %p1976_p0, %p1970_p11 }
  0x24   :  { %1980 = shalt.err (!%p1977_p1)
}
  0x25   :  { %s2082_s10 = smov 64   ;;  %s2083_s14 = smov 4  }
  0x26   :  { %69 = dma.hbm_to_vmem [thread:$0]  %s2244_s5, 1024, %s64_s24, [#allocation9], %s2082_s10, %s2082_s10, %s2083_s14  }
  0x27   :  { %s1981_s21 = scalar_lea.hbm %s2239_s0, 2688 }
  0x28   :  { %p1982_p2 = scmp.ne.s32.totalorder %s2239_s0, %s1981_s21  ;;  %p1985_p3 = scmp.lt.u32.totalorder %s1981_s21, %s2239_s0 }
  0x2a   :  { %p1987_p4 = pnand %p1985_p3, %p1982_p2 }
  0x2c   :  { %1990 = shalt.err (!%p1987_p4)
}
  0x2d   :  { %s1991_s28 = scalar_lea.vmem %s24_s26, 2688  ;;  %s1995_s29 = scalar_lea.vmem %s24_s26, 3584 }
  0x2e   :  { %p1992_p5 = scmp.ne.s32.totalorder %s24_s26, %s1991_s28  ;;  %p1996_p6 = scmp.lt.s32.totalorder %s24_s26, %s24_s26 }
  0x2f   :  { %p1997_p7 = scmp.lt.s32.totalorder %s1995_s29, %s1991_s28 }
  0x31   :  { %p1998_p8 = por %p1997_p7, %p1996_p6 }
  0x33   :  { %p1999_p9 = pnand %p1998_p8, %p1992_p5 }
  0x35   :  { %2002 = shalt.err (!%p1999_p9)
}
  0x36   :  { %s2084_s5 = smov 896   ;;  %s2085_s24 = smov 56  }
  0x37   :  { %29 = dma.hbm_to_vmem [thread:$0]  %s2239_s0, 2688, %s24_s26, [#allocation3], %s2084_s5, %s2084_s5, %s2085_s24  }
  0x38   :  { %s2086_s12 = smov [#allocation7]   ;;  %s2087_s1 = smov [#allocation10]  }
  0x39   :  { %s49_s13 = sshll.u32 %s2086_s12, 4  ;;  %s77_s15 = sshll.u32 %s2087_s1, 4  ;;  %s50_s13 = int_to_ptr.vmem [resolvable:$true] %s49_s13  ;;  %s78_s15 = int_to_ptr.vmem [resolvable:$true] %s77_s15 }
  0x3a   :  { %s2003_s18 = scalar_lea.hbm %s2242_s3, 2048 }
  0x3b   :  { %p2004_p10 = scmp.ne.s32.totalorder %s2242_s3, %s2003_s18  ;;  %p2007_p11 = scmp.lt.u32.totalorder %s2003_s18, %s2242_s3 }
  0x3d   :  { %p2009_p12 = pnand %p2007_p11, %p2004_p10 }
  0x3f   :  { %2012 = shalt.err (!%p2009_p12)
}
  0x40   :  { %s2013_s0 = scalar_lea.vmem %s50_s13, 2048  ;;  %p2018_p0 = scmp.lt.s32.totalorder %s50_s13, %s50_s13 }
  0x41   :  { %p2014_p13 = scmp.ne.s32.totalorder %s50_s13, %s2013_s0  ;;  %p2019_p1 = scmp.lt.s32.totalorder %s2013_s0, %s2013_s0 }
  0x43   :  { %p2020_p2 = por %p2019_p1, %p2018_p0 }
  0x45   :  { %p2021_p3 = pnand %p2020_p2, %p2014_p13 }
  0x47   :  { %2024 = shalt.err (!%p2021_p3)
}
  0x48   :  { %55 = dma.hbm_to_vmem [thread:$0]  %s2242_s3, 2048, %s50_s13, [#allocation6], %s2082_s10, %s2082_s10, %s2083_s14  }
  0x49   :  { %s2025_s5 = scalar_lea.hbm %s2246_s7, 1024 }
  0x4a   :  { %p2026_p4 = scmp.ne.s32.totalorder %s2246_s7, %s2025_s5  ;;  %p2029_p5 = scmp.lt.u32.totalorder %s2025_s5, %s2246_s7 }
  0x4c   :  { %p2031_p6 = pnand %p2029_p5, %p2026_p4 }
  0x4e   :  { %2034 = shalt.err (!%p2031_p6)
}
  0x4f   :  { %s2035_s1 = scalar_lea.vmem %s78_s15, 1024  ;;  %p2040_p8 = scmp.lt.s32.totalorder %s78_s15, %s78_s15 }
  0x50   :  { %p2036_p7 = scmp.ne.s32.totalorder %s78_s15, %s2035_s1  ;;  %p2041_p9 = scmp.lt.s32.totalorder %s2035_s1, %s2035_s1 }
  0x52   :  { %p2042_p10 = por %p2041_p9, %p2040_p8 }
  0x54   :  { %p2043_p11 = pnand %p2042_p10, %p2036_p7 }
  0x56   :  { %2046 = shalt.err (!%p2043_p11)
}
  0x57   :  { %83 = dma.hbm_to_vmem [thread:$0]  %s2246_s7, 1024, %s78_s15, [#allocation9], %s2082_s10, %s2082_s10, %s2083_s14  }
  0x58   :  { %2069 = dma.done.wait [#allocation3], 3584  }
  0x59   :  { %2070 = vsyncadd [#allocation3], 4294963712 }
  0x5a   :  { %2071 = dma.done.wait [#allocation6], 14592  }
  0x5b   :  { %2072 = vsyncadd [#allocation6], 4294952704 }
  0x5c   :  { %2073 = dma.done.wait [#allocation9], 2048  }
  0x5d   :  { %2074 = vsyncadd [#allocation9], 4294965248  ;;  %v1742_v0 = vld [vmem:[#allocation5 + $0x104] ss:$8 sps:$4 sm:$0xff]   ;;  %v1744_v1 = vld [vmem:[#allocation5 + $0x100] ss:$8 sps:$4 sm:$0xff]  }
  0x5e   :  { %804 = vmatprep.subr.bf16.mxu0 %v1742_v0  ;;  %v1745_v2 = vld [vmem:[#allocation5 + $0x114] ss:$8 sps:$4 sm:$0xff]   ;;  %v1747_v3 = vld [vmem:[#allocation5 + $0x110] ss:$8 sps:$4 sm:$0xff]   ;;  %v1748_v4 = vld [vmem:[#allocation5 + $0x124] ss:$8 sps:$4 sm:$0xff]  }
  0x5f   :  { %805 = vmatpush1.bf16.msra.mxu0 %v1744_v1  ;;  %v1750_v5 = vld [vmem:[#allocation5 + $0x120] ss:$8 sps:$4 sm:$0xff]   ;;  %v1751_v6 = vld [vmem:[#allocation5 + $0x134] ss:$8 sps:$4 sm:$0xff]   ;;  %v1753_v7 = vld [vmem:[#allocation5 + $0x130] ss:$8 sps:$4 sm:$0xff]  }
  0x60   :  { %806 = vmatprep.subr.bf16.mxu0 %v1745_v2  ;;  %v1754_v8 = vld [vmem:[#allocation5 + $0x144] ss:$8 sps:$4 sm:$0xff]   ;;  %v1756_v9 = vld [vmem:[#allocation5 + $0x140] ss:$8 sps:$4 sm:$0xff]   ;;  %v1757_v10 = vld [vmem:[#allocation5 + $0x154] ss:$8 sps:$4 sm:$0xff]  }
  0x61   :  { %v1759_v11 = vld [vmem:[#allocation5 + $0x150] ss:$8 sps:$4 sm:$0xff]   ;;  %v1760_v12 = vld [vmem:[#allocation5 + $0x164] ss:$8 sps:$4 sm:$0xff]   ;;  %v1762_v16 = vld [vmem:[#allocation5 + $0x160] ss:$8 sps:$4 sm:$0xff]  }
  0x62   :  { %v105_v13 = vld [vmem:[#allocation2 + $0x18] sm:$0xff]  ;;  %v112_v14 = vld [vmem:[#allocation2 + $0x50] sm:$0xff]  ;;  %v1799_v19 = vld [vmem:[#allocation5 + $0x4] ss:$8 sps:$4 sm:$0xff]   ;;  %vm744_vm0 = vcmask 130048  }
  0x63   :  { %807 = vmatpush1.bf16.msra.mxu0 %v1747_v3  ;;  %v133_v15 = vpack.c.bf16 %v112_v14, %v105_v13  ;;  %v1763_v17 = vld [vmem:[#allocation5 + $0x174] ss:$8 sps:$4 sm:$0xff]   ;;  %v1765_v18 = vld [vmem:[#allocation5 + $0x170] ss:$8 sps:$4 sm:$0xff]   ;;  %v1766_v20 = vld [vmem:[#allocation5 + $0x184] ss:$8 sps:$4 sm:$0xff]   ;;  %751 = vmatprep.subr.bf16.mxu1 %v1799_v19 }
  0x64   :  { %808 = vmatprep.subr.bf16.mxu0 %v1748_v4  ;;  %v1804_v21 = vld [vmem:[#allocation5] ss:$8 sps:$4 sm:$0xff]   ;;  %v1805_v22 = vld [vmem:[#allocation5 + $0x14] ss:$8 sps:$4 sm:$0xff]   ;;  %v1810_v25 = vld [vmem:[#allocation5 + $0x10] ss:$8 sps:$4 sm:$0xff]  }
  0x65   :  { %836 = vmatprep.mubr.bf16.mxu0 %v133_v15  ;;  %v1768_v23 = vld [vmem:[#allocation5 + $0x180] ss:$8 sps:$4 sm:$0xff]   ;;  %v1769_v24 = vld [vmem:[#allocation5 + $0x194] ss:$8 sps:$4 sm:$0xff]   ;;  %752 = vmatpush1.bf16.msra.mxu1 %v1804_v21  ;;  %v1811_v26 = vld [vmem:[#allocation5 + $0x24] ss:$8 sps:$4 sm:$0xff]  }
  0x66   :  { %753 = vmatprep.subr.bf16.mxu1 %v1805_v22  ;;  %v1771_v27 = vld [vmem:[#allocation5 + $0x190] ss:$8 sps:$4 sm:$0xff]   ;;  %v1816_v28 = vld [vmem:[#allocation5 + $0x20] ss:$8 sps:$4 sm:$0xff]   ;;  %v1772_v29 = vld [vmem:[#allocation5 + $0x1a4] ss:$8 sps:$4 sm:$0xff]  }
  0x67   :  { %809 = vmatpush1.bf16.msra.mxu0 %v1750_v5  ;;  %v1817_v30 = vld [vmem:[#allocation5 + $0x34] ss:$8 sps:$4 sm:$0xff]   ;;  %v1774_v31 = vld [vmem:[#allocation5 + $0x1a0] ss:$8 sps:$4 sm:$0xff]   ;;  %v1822_v33 = vld [vmem:[#allocation5 + $0x30] ss:$8 sps:$4 sm:$0xff]  }
  0x68   :  { %810 = vmatprep.subr.bf16.mxu0 %v1751_v6  ;;  %v1775_v32 = vld [vmem:[#allocation5 + $0x1b4] ss:$8 sps:$4 sm:$0xff]   ;;  %v1823_v34 = vld [vmem:[#allocation5 + $0x44] ss:$8 sps:$4 sm:$0xff]   ;;  %v1777_v35 = vld [vmem:[#allocation5 + $0x1b0] ss:$8 sps:$4 sm:$0xff]  }
  0x69   :  { %754 = vmatpush1.bf16.msra.mxu1 %v1810_v25  ;;  %v1828_v36 = vld [vmem:[#allocation5 + $0x40] ss:$8 sps:$4 sm:$0xff]   ;;  %v1778_v37 = vld [vmem:[#allocation5 + $0x1c4] ss:$8 sps:$4 sm:$0xff]   ;;  %v1829_v38 = vld [vmem:[#allocation5 + $0x54] ss:$8 sps:$4 sm:$0xff]  }
  0x6a   :  { %755 = vmatprep.subr.bf16.mxu1 %v1811_v26  ;;  %v1780_v39 = vld [vmem:[#allocation5 + $0x1c0] ss:$8 sps:$4 sm:$0xff]   ;;  %v1781_v40 = vld [vmem:[#allocation5 + $0x1d4] ss:$8 sps:$4 sm:$0xff]   ;;  %v1834_v41 = vld [vmem:[#allocation5 + $0x50] ss:$8 sps:$4 sm:$0xff]  }
  0x6b   :  { %811 = vmatpush1.bf16.msra.mxu0 %v1753_v7  ;;  %v1835_v42 = vld [vmem:[#allocation5 + $0x64] ss:$8 sps:$4 sm:$0xff]   ;;  %v1783_v43 = vld [vmem:[#allocation5 + $0x1d0] ss:$8 sps:$4 sm:$0xff]   ;;  %v1840_v44 = vld [vmem:[#allocation5 + $0x60] ss:$8 sps:$4 sm:$0xff]  }
  0x6c   :  { %812 = vmatprep.subr.bf16.mxu0 %v1754_v8  ;;  %v1784_v45 = vld [vmem:[#allocation5 + $0x1e4] ss:$8 sps:$4 sm:$0xff]   ;;  %v1841_v46 = vld [vmem:[#allocation5 + $0x74] ss:$8 sps:$4 sm:$0xff]   ;;  %v1786_v47 = vld [vmem:[#allocation5 + $0x1e0] ss:$8 sps:$4 sm:$0xff]  }
  0x6d   :  { %756 = vmatpush1.bf16.msra.mxu1 %v1816_v28  ;;  %v1846_v48 = vld [vmem:[#allocation5 + $0x70] ss:$8 sps:$4 sm:$0xff]   ;;  %v1787_v49 = vld [vmem:[#allocation5 + $0x1f4] ss:$8 sps:$4 sm:$0xff]   ;;  %v1847_v50 = vld [vmem:[#allocation5 + $0x84] ss:$8 sps:$4 sm:$0xff]  }
  0x6e   :  { %757 = vmatprep.subr.bf16.mxu1 %v1817_v30  ;;  %v1789_v51 = vld [vmem:[#allocation5 + $0x1f0] ss:$8 sps:$4 sm:$0xff]   ;;  %v1792_v52 = vld [vmem:[#allocation5 + $0x204] ss:$8 sps:$4 sm:$0xff]   ;;  %v1852_v55 = vld [vmem:[#allocation5 + $0x80] ss:$8 sps:$4 sm:$0xff]  }
  0x6f   :  { %813 = vmatpush1.bf16.msra.mxu0 %v1756_v9  ;;  %v104_v53 = vld [vmem:[#allocation2 + $0x10] sm:$0xff]  ;;  %v111_v54 = vld [vmem:[#allocation2 + $0x48] sm:$0xff]  ;;  %v126_v60 = vld [vmem:[#allocation2 + $0xc0] sm:$0xff] }
  0x70   :  { %814 = vmatprep.subr.bf16.mxu0 %v1757_v10  ;;  %v1853_v56 = vld [vmem:[#allocation5 + $0x94] ss:$8 sps:$4 sm:$0xff]   ;;  %v1790_v57 = vld [vmem:[#allocation5 + $0x200] ss:$8 sps:$4 sm:$0xff]   ;;  %v132_v58 = vpack.c.bf16 %v111_v54, %v104_v53  ;;  %v1858_v61 = vld [vmem:[#allocation5 + $0x90] ss:$8 sps:$4 sm:$0xff]  }
  0x71   :  { %758 = vmatpush1.bf16.msra.mxu1 %v1822_v33  ;;  %v119_v59 = vld [vmem:[#allocation2 + $0x88] sm:$0xff]  ;;  %v1795_v62 = vld [vmem:[#allocation5 + $0x214] ss:$8 sps:$4 sm:$0xff]   ;;  %v1793_v1 = vld [vmem:[#allocation5 + $0x210] ss:$8 sps:$4 sm:$0xff]  }
  0x72   :  { %759 = vmatprep.subr.bf16.mxu1 %v1823_v34  ;;  %v1859_v63 = vld [vmem:[#allocation5 + $0xa4] ss:$8 sps:$4 sm:$0xff]   ;;  %v140_v0 = vpack.c.bf16 %v126_v60, %v119_v59  ;;  %v1864_v2 = vld [vmem:[#allocation5 + $0xa0] ss:$8 sps:$4 sm:$0xff]   ;;  %v125_v4 = vld [vmem:[#allocation2 + $0xb8] sm:$0xff] }
  0x73   :  { %815 = vmatpush1.bf16.msra.mxu0 %v1759_v11  ;;  %v118_v3 = vld [vmem:[#allocation2 + $0x80] sm:$0xff]  ;;  %v1865_v6 = vld [vmem:[#allocation5 + $0xb4] ss:$8 sps:$4 sm:$0xff]   ;;  %v107_v8 = vld [vmem:[#allocation2 + $0x28] sm:$0xff] }
  0x74   :  { %816 = vmatprep.subr.bf16.mxu0 %v1760_v12  ;;  %v1798_v5 = vld [vmem:[#allocation5 + $0x224] ss:$8 sps:$4 sm:$0xff]   ;;  %v139_v7 = vpack.c.bf16 %v125_v4, %v118_v3  ;;  %v1796_v11 = vld [vmem:[#allocation5 + $0x220] ss:$8 sps:$4 sm:$0xff]   ;;  %v1870_v12 = vld [vmem:[#allocation5 + $0xb0] ss:$8 sps:$4 sm:$0xff]  }
  0x75   :  { %760 = vmatpush1.bf16.msra.mxu1 %v1828_v36  ;;  %v114_v9 = vld [vmem:[#allocation2 + $0x60] sm:$0xff]  ;;  %v103_v10 = vld [vmem:[#allocation2 + $0x8] sm:$0xff]  ;;  %v1803_v14 = vld [vmem:[#allocation5 + $0x234] ss:$8 sps:$4 sm:$0xff]  }
  0x76   :  { %761 = vmatprep.subr.bf16.mxu1 %v1829_v38  ;;  %v110_v13 = vld [vmem:[#allocation2 + $0x40] sm:$0xff]  ;;  %v1877_v21 = vld [vmem:[#allocation5 + $0xd4] ss:$8 sps:$4 sm:$0xff]   ;;  %v1813_v26 = vld [vmem:[#allocation5 + $0x250] ss:$8 sps:$4 sm:$0xff]  }
  0x77   :  { %817 = vmatpush1.bf16.msra.mxu0 %v1762_v16  ;;  %v1871_v15 = vld [vmem:[#allocation5 + $0xc4] ss:$8 sps:$4 sm:$0xff]   ;;  %v131_v16 = vpack.c.bf16 %v110_v13, %v103_v10  ;;  %v1807_v22 = vld [vmem:[#allocation5 + $0x240] ss:$8 sps:$4 sm:$0xff]   ;;  %v109_v33 = vld [vmem:[#allocation2 + $0x38] sm:$0xff] }
  0x78   :  { %818 = vmatprep.subr.bf16.mxu0 %v1763_v17  ;;  %v135_v17 = vpack.c.bf16 %v114_v9, %v107_v8  ;;  %v1809_v19 = vld [vmem:[#allocation5 + $0x244] ss:$8 sps:$4 sm:$0xff]   ;;  %v1885_v28 = vld [vmem:[#allocation5 + $0xe0] ss:$8 sps:$4 sm:$0xff]   ;;  %v1827_v34 = vld [vmem:[#allocation5 + $0x274] ss:$8 sps:$4 sm:$0xff]  }
  0x79   :  { %762 = vmatpush1.bf16.msra.mxu1 %v1834_v41  ;;  %783 = vmatprep.mubr.bf16.mxu1 %v131_v16  ;;  %v1883_v25 = vld [vmem:[#allocation5 + $0xe4] ss:$8 sps:$4 sm:$0xff]   ;;  %v1819_v30 = vld [vmem:[#allocation5 + $0x260] ss:$8 sps:$4 sm:$0xff]   ;;  %v124_v36 = vld [vmem:[#allocation2 + $0xb0] sm:$0xff] }
  0x7a   :  { %763 = vmatprep.subr.bf16.mxu1 %v1835_v42  ;;  %v1825_v38 = vld [vmem:[#allocation5 + $0x270] ss:$8 sps:$4 sm:$0xff]   ;;  %v1894_v53 = vld [vmem:[#allocation7 + $0x10] sm:$0xff]   ;;  %v1895_v54 = vld [vmem:[#allocation7 + $0x58] sm:$0xff]  }
  0x7b   :  { %819 = vmatpush1.bf16.msra.mxu0 %v1765_v18  ;;  %v1801_v18 = vld [vmem:[#allocation5 + $0x230] ss:$8 sps:$4 sm:$0xff]   ;;  %v1857_v60 = vld [vmem:[#allocation5 + $0x2c4] ss:$8 sps:$4 sm:$0xff]   ;;  %v1879_v10 = vld [vmem:[#allocation5 + $0x300] ss:$8 sps:$4 sm:$0xff]  }
  0x7c   :  { %820 = vmatprep.subr.bf16.mxu0 %v1766_v20  ;;  %v1876_v20 = vld [vmem:[#allocation5 + $0xc0] ss:$8 sps:$4 sm:$0xff]   ;;  %v1890_v41 = vld [vmem:[#allocation7] sm:$0xff]  }
  0x7d   :  { %764 = vmatpush1.bf16.msra.mxu1 %v1840_v44  ;;  %v1831_v44 = vld [vmem:[#allocation5 + $0x280] ss:$8 sps:$4 sm:$0xff]   ;;  %v1849_v59 = vld [vmem:[#allocation5 + $0x2b0] ss:$8 sps:$4 sm:$0xff]  }
  0x7e   :  { %765 = vmatprep.subr.bf16.mxu1 %v1841_v46  ;;  %v123_v46 = vld [vmem:[#allocation2 + $0xa8] sm:$0xff]  ;;  %v1873_v3 = vld [vmem:[#allocation5 + $0x2f0] ss:$8 sps:$4 sm:$0xff]   ;;  %v106_v4 = vld [vmem:[#allocation2 + $0x20] sm:$0xff] }
  0x7f   :  { %821 = vmatpush1.bf16.msra.mxu0 %v1768_v23  ;;  %v1815_v23 = vld [vmem:[#allocation5 + $0x254] ss:$8 sps:$4 sm:$0xff]   ;;  %v127_v13 = vld [vmem:[#allocation2 + $0xc8] sm:$0xff] }
  0x80   :  { %822 = vmatprep.subr.bf16.mxu0 %v1769_v24  ;;  %v1882_v24 = vld [vmem:[#allocation5 + $0xd0] ss:$8 sps:$4 sm:$0xff]  }
  0x81   :  { %766 = vmatpush1.bf16.msra.mxu1 %v1846_v48  ;;  %v1892_v48 = vld [vmem:[#allocation7 + $0x8] sm:$0xff]   ;;  %v128_v8 = vld [vmem:[#allocation2 + $0xd0] sm:$0xff] }
  0x82   :  { %767 = vmatprep.subr.bf16.mxu1 %v1847_v50  ;;  %v108_v16 = vld [vmem:[#allocation2 + $0x30] sm:$0xff] }
  0x83   :  { %823 = vmatpush1.bf16.msra.mxu0 %v1771_v27  ;;  %v1821_v27 = vld [vmem:[#allocation5 + $0x264] ss:$8 sps:$4 sm:$0xff]  }
  0x84   :  { %824 = vmatprep.subr.bf16.mxu0 %v1772_v29  ;;  %v1886_v29 = vld [vmem:[#allocation5 + $0xf4] ss:$8 sps:$4 sm:$0xff]  }
  0x85   :  { %768 = vmatpush1.bf16.msra.mxu1 %v1852_v55  ;;  %v1843_v55 = vld [vmem:[#allocation5 + $0x2a0] ss:$8 sps:$4 sm:$0xff]  }
  0x86   :  { %769 = vmatprep.subr.bf16.mxu1 %v1853_v56  ;;  %v1851_v56 = vld [vmem:[#allocation5 + $0x2b4] ss:$8 sps:$4 sm:$0xff]  }
  0x87   :  { %825 = vmatpush1.bf16.msra.mxu0 %v1774_v31  ;;  %v1888_v31 = vld [vmem:[#allocation5 + $0xf0] ss:$8 sps:$4 sm:$0xff]  }
  0x88   :  { %826 = vmatprep.subr.bf16.mxu0 %v1775_v32  ;;  %v102_v32 = vld [vmem:[#allocation2] sm:$0xff] }
  0x89   :  { %770 = vmatpush1.bf16.msra.mxu1 %v1858_v61  ;;  %v1855_v61 = vld [vmem:[#allocation5 + $0x2c0] ss:$8 sps:$4 sm:$0xff]  }
  0x8a   :  { %771 = vmatprep.subr.bf16.mxu1 %v1859_v63  ;;  %v1861_v63 = vld [vmem:[#allocation5 + $0x2d0] ss:$8 sps:$4 sm:$0xff]  }
  0x8b   :  { %827 = vmatpush1.bf16.msra.mxu0 %v1777_v35  ;;  %v117_v35 = vld [vmem:[#allocation2 + $0x78] sm:$0xff] }
  0x8c   :  { %828 = vmatprep.subr.bf16.mxu0 %v1778_v37  ;;  %v1889_v37 = vld [vmem:[#allocation7 + $0x40] sm:$0xff]   ;;  %v138_v42 = vpack.c.bf16 %v124_v36, %v117_v35 }
  0x8d   :  { %772 = vmatpush1.bf16.msra.mxu1 %v1864_v2  ;;  %v1875_v2 = vld [vmem:[#allocation5 + $0x2f4] ss:$8 sps:$4 sm:$0xff]  }
  0x8e   :  { %773 = vmatprep.subr.bf16.mxu1 %v1865_v6  ;;  %v1881_v6 = vld [vmem:[#allocation5 + $0x304] ss:$8 sps:$4 sm:$0xff]  }
  0x8f   :  { %829 = vmatpush1.bf16.msra.mxu0 %v1780_v39  ;;  %v1833_v39 = vld [vmem:[#allocation5 + $0x284] ss:$8 sps:$4 sm:$0xff]  }
  0x90   :  { %830 = vmatprep.subr.bf16.mxu0 %v1781_v40  ;;  %v130_v40 = vpack.c.bf16 %v109_v33, %v102_v32 }
  0x91   :  { %774 = vmatpush1.bf16.msra.mxu1 %v1870_v12  ;;  %v120_v12 = vld [vmem:[#allocation2 + $0x90] sm:$0xff] }
  0x92   :  { %775 = vmatprep.subr.bf16.mxu1 %v1871_v15  ;;  %v2088_v15 = vmov 0  }
  0x93   :  { %831 = vmatpush1.bf16.msra.mxu0 %v1783_v43  ;;  %v1891_v43 = vld [vmem:[#allocation7 + $0x48] sm:$0xff]  }
  0x94   :  { %832 = vmatprep.subr.bf16.mxu0 %v1784_v45  ;;  %v116_v45 = vld [vmem:[#allocation2 + $0x70] sm:$0xff] }
  0x95   :  { %776 = vmatpush1.bf16.msra.mxu1 %v1876_v20  ;;  %v137_v50 = vpack.c.bf16 %v123_v46, %v116_v45  ;;  %v129_v20 = vld [vmem:[#allocation2 + $0xd8] sm:$0xff] }
  0x96   :  { %777 = vmatprep.subr.bf16.mxu1 %v1877_v21 }
  0x97   :  { %833 = vmatpush1.bf16.msra.mxu0 %v1786_v47  ;;  %v1839_v47 = vld [vmem:[#allocation5 + $0x294] ss:$8 sps:$4 sm:$0xff]  }
  0x98   :  { %834 = vmatprep.subr.bf16.mxu0 %v1787_v49  ;;  %v1893_v49 = vld [vmem:[#allocation7 + $0x50] sm:$0xff]  }
  0x99   :  { %778 = vmatpush1.bf16.msra.mxu1 %v1882_v24  ;;  %v1900_v24 = vld [vmem:[#allocation7 + $0x28] sm:$0xff]  }
  0x9a   :  { %779 = vmatprep.subr.bf16.mxu1 %v1883_v25  ;;  %v1901_v25 = vld [vmem:[#allocation7 + $0x70] sm:$0xff]  }
  0x9b   :  { %835 = vmatpush1.bf16.msra.mxu0 %v1789_v51  ;;  %v1837_v51 = vld [vmem:[#allocation5 + $0x290] ss:$8 sps:$4 sm:$0xff]  }
  0x9c   :  { %857 = vmatprep.subr.bf16.mxu0 %v1792_v52  ;;  %v1845_v52 = vld [vmem:[#allocation5 + $0x2a4] ss:$8 sps:$4 sm:$0xff]  }
  0x9d   :  { %780 = vmatpush1.bf16.msra.mxu1 %v1885_v28  ;;  %v1904_v28 = vld [vmem:[#allocation7 + $0x38] sm:$0xff]  }
  0x9e   :  { %837 = vmatmul.mubr.bf16.vlgmr.msra.gmra.mrb[0].mxu0 %v132_v58  ;;  %781 = vmatprep.subr.bf16.mxu1 %v1886_v29  ;;  %v1897_v58 = vld [vmem:[#allocation7 + $0x60] sm:$0xff]  }
  0x9f   :  { %858 = vmatpush1.bf16.msra.mxu0 %v1790_v57  ;;  %846 = vmatprep.mubr.bf16.mxu0 %v140_v0  ;;  %v1896_v57 = vld [vmem:[#allocation7 + $0x18] sm:$0xff]   ;;  %v1905_v29 = vld [vmem:[#allocation8] sm:$0xff]  }
  0xa0   :  { %859 = vmatprep.subr.bf16.mxu0 %v1795_v62  ;;  %v1863_v62 = vld [vmem:[#allocation5 + $0x2d4] ss:$8 sps:$4 sm:$0xff]   ;;  %v1869_v0 = vld [vmem:[#allocation5 + $0x2e4] ss:$8 sps:$4 sm:$0xff]  }
  0xa1   :  { %782 = vmatpush1.bf16.msra.mxu1 %v1888_v31 }
  0xa2   :  { %1609 = vmatprep.subr.bf16.mxu1 %v1889_v37 }
  0xa3   :  { %860 = vmatpush1.bf16.msra.mxu0 %v1793_v1  ;;  %v1867_v1 = vld [vmem:[#allocation5 + $0x2e0] ss:$8 sps:$4 sm:$0xff]  }
  0xa4   :  { %861 = vmatprep.subr.bf16.mxu0 %v1798_v5  ;;  %784 = vmatmul.mubr.bf16.vlgmr.msra.gmra.mrb[0].mxu1 %v130_v40  ;;  %v113_v5 = vld [vmem:[#allocation2 + $0x58] sm:$0xff] }
  0xa5   :  { %793 = vmatprep.mubr.bf16.mxu1 %v138_v42  ;;  %1610 = vmatpush3.bf16.msra.mxu1 %v1890_v41  ;;  %v134_v9 = vpack.c.bf16 %v113_v5, %v106_v4  ;;  %v242_v41 = vld [vmem:[%s2241_s2] sm:$0x3]  ;;  %v1906_v5 = vld [vmem:[#allocation8 + $0x8] sm:$0xff]  }
  0xa6   :  { %847 = vmatmul.mubr.bf16.gmra.mrb[4].mxu0 %v139_v7  ;;  %1611 = vmatprep.subr.bf16.mxu1 %v1891_v43  ;;  %v121_v7 = vld [vmem:[#allocation2 + $0x98] sm:$0xff] }
  0xa7   :  { %862 = vmatpush1.bf16.msra.mxu0 %v1796_v11  ;;  %889 = vmatprep.mubr.bf16.mxu0 %v135_v17  ;;  %v142_v11 = vpack.c.bf16 %v128_v8, %v121_v7  ;;  %v115_v17 = vld [vmem:[#allocation2 + $0x68] sm:$0xff] }
  0xa8   :  { %863 = vmatprep.subr.bf16.mxu0 %v1803_v14  ;;  %v141_v14 = vpack.c.bf16 %v127_v13, %v120_v12 }
  0xa9   :  { %1612 = vmatpush3.bf16.msra.mxu1 %v1892_v48 }
  0xaa   :  { %1613 = vmatprep.subr.bf16.mxu1 %v1893_v49 }
  0xab   :  { %864 = vmatpush1.bf16.msra.mxu0 %v1801_v18  ;;  %v136_v18 = vpack.c.bf16 %v115_v17, %v108_v16 }
  0xac   :  { %865 = vmatprep.subr.bf16.mxu0 %v1809_v19  ;;  %794 = vmatmul.mubr.bf16.gmra.mrb[4].mxu1 %v137_v50  ;;  %v122_v19 = vld [vmem:[#allocation2 + $0xa0] sm:$0xff] }
  0xad   :  { %1614 = vmatpush3.bf16.msra.mxu1 %v1894_v53  ;;  %v143_v21 = vpack.c.bf16 %v129_v20, %v122_v19  ;;  %v1908_v19 = vld [vmem:[#allocation8 + $0x18] sm:$0xff]   ;;  %v1909_v20 = vld [vmem:[#allocation8 + $0x20] sm:$0xff]  }
  0xae   :  { %1615 = vmatprep.subr.bf16.mxu1 %v1895_v54 }
  0xaf   :  { %866 = vmatpush1.bf16.msra.mxu0 %v1807_v22  ;;  %v1898_v22 = vld [vmem:[#allocation7 + $0x20] sm:$0xff]  }
  0xb0   :  { %867 = vmatprep.subr.bf16.mxu0 %v1815_v23  ;;  %v1899_v23 = vld [vmem:[#allocation7 + $0x68] sm:$0xff]  }
  0xb1   :  { %1616 = vmatpush3.bf16.msra.mxu1 %v1896_v57 }
  0xb2   :  { %1617 = vmatprep.subr.bf16.mxu1 %v1897_v58 }
  0xb3   :  { %868 = vmatpush1.bf16.msra.mxu0 %v1813_v26  ;;  %v1902_v26 = vld [vmem:[#allocation7 + $0x30] sm:$0xff]  }
  0xb4   :  { %869 = vmatprep.subr.bf16.mxu0 %v1821_v27  ;;  %v1903_v27 = vld [vmem:[#allocation7 + $0x78] sm:$0xff]  }
  0xb5   :  { %1618 = vmatpush3.bf16.msra.mxu1 %v1898_v22  ;;  %v1911_v22 = vld [vmem:[#allocation8 + $0x30] sm:$0xff]  }
  0xb6   :  { %1619 = vmatprep.subr.bf16.mxu1 %v1899_v23  ;;  %v1912_v23 = vld [vmem:[#allocation8 + $0x38] sm:$0xff]  }
  0xb7   :  { %870 = vmatpush1.bf16.msra.mxu0 %v1819_v30 }
  0xb8   :  { %871 = vmatprep.subr.bf16.mxu0 %v1827_v34 }
  0xb9   :  { %1620 = vmatpush3.bf16.msra.mxu1 %v1900_v24  ;;  %v1913_v24 = vld [vmem:[#allocation10] sm:$0xff]  }
  0xba   :  { %1621 = vmatprep.subr.bf16.mxu1 %v1901_v25 }
  0xbb   :  { %872 = vmatpush1.bf16.msra.mxu0 %v1825_v38  ;;  %v244_v38 = vlaneseq }
  0xbc   :  { %873 = vmatprep.subr.bf16.mxu0 %v1833_v39 }
  0xbd   :  { %1622 = vmatpush3.bf16.msra.mxu1 %v1902_v26  ;;  %v245_v39 = vshrl.u32 %v244_v38, 7  ;;  %v1574_v26 = vld [vmem:[%s2243_s4] ss:$0 sm:$0xff] }
  0xbe   :  { %1623 = vmatprep.subr.bf16.mxu1 %v1903_v27 }
  0xbf   :  { %874 = vmatpush1.bf16.msra.mxu0 %v1831_v44  ;;  %v246_v40 = vsub.s32 0, %v245_v39  ;;  %v250_v42 = vsub.s32 1, %v245_v39 }
  0xc0   :  { %875 = vmatprep.subr.bf16.mxu0 %v1839_v47 }
  0xc1   :  { %1624 = vmatpush3.bf16.msra.mxu1 %v1904_v28  ;;  %v247_v43 = vrot.slane %v242_v41, %v246_v40  ;;  %v251_v44 = vrot.slane %v242_v41, %v250_v42 }
  0xc2   :  { %1657 = vmatprep.subr.bf16.mxu1 %v1905_v29 }
  0xc3   :  { %876 = vmatpush1.bf16.msra.mxu0 %v1837_v51 }
  0xc4   :  { %877 = vmatprep.subr.bf16.mxu0 %v1845_v52 }
  0xc7   :  { %878 = vmatpush1.bf16.msra.mxu0 %v1843_v55 }
  0xc8   :  { %879 = vmatprep.subr.bf16.mxu0 %v1851_v56 }
  0xcb   :  { %880 = vmatpush1.bf16.msra.mxu0 %v1849_v59 }
  0xcc   :  { %881 = vmatprep.subr.bf16.mxu0 %v1857_v60 }
  0xcf   :  { %882 = vmatpush1.bf16.msra.mxu0 %v1855_v61 }
  0xd0   :  { %883 = vmatprep.subr.bf16.mxu0 %v1863_v62 }
  0xd3   :  { %884 = vmatpush1.bf16.msra.mxu0 %v1861_v63 }
  0xd4   :  { %885 = vmatprep.subr.bf16.mxu0 %v1869_v0 }
  0xd7   :  { %886 = vmatpush1.bf16.msra.mxu0 %v1867_v1 }
  0xd8   :  { %887 = vmatprep.subr.bf16.mxu0 %v1875_v2 }
  0xdb   :  { %888 = vmatpush1.bf16.msra.mxu0 %v1873_v3 }
  0xdc   :  { %910 = vmatprep.subr.bf16.mxu0 %v1881_v6 }
  0xde   :  { %890 = vmatmul.mubr.bf16.vlgmr.msra.gmra.mrb[0].mxu0 %v134_v9 }
  0xdf   :  { %911 = vmatpush1.bf16.msra.mxu0 %v1879_v10  ;;  %899 = vmatprep.mubr.bf16.mxu0 %v142_v11 }
  0xe6   :  { %900 = vmatmul.mubr.bf16.gmra.mrb[4].mxu0 %v141_v14  ;;  %v1907_v14 = vld [vmem:[#allocation8 + $0x10] sm:$0xff]  }
  0xe7   :  { %942 = vmatprep.mubr.bf16.mxu0 %v2088_v15 }
  0xee   :  { %1572 = vmatmul.mubr.msk.bf16.vlgmr.msra.gmra.mrb[0].mxu0 %vm744_vm0, %v136_v18 }
  0xef   :  { %952 = vmatprep.mubr.bf16.mxu0 %v2088_v15 }
  0xf6   :  { %1573 = vmatmul.mubr.msk.bf16.gmra.mrb[4].mxu0 %vm744_vm0, %v143_v21  ;;  %v1910_v21 = vld [vmem:[#allocation8 + $0x28] sm:$0xff]  }
 0x177   :  { %v785_v30 = vpop.f32.mrb[0].mxu1 }
 0x178   :  { %v787_v31 = vpop.f32.mrb[1].mxu1  ;;  %v786_v45 = vadd.f32 %v785_v30, %v247_v43 }
 0x179   :  { %v789_v32 = vpop.f32.mrb[2].mxu1  ;;  %v788_v46 = vadd.f32 %v787_v31, %v251_v44 }
 0x17a   :  { %v791_v33 = vpop.f32.mrb[3].mxu1  ;;  %v790_v48 = vadd.f32 %v789_v32, %v247_v43 }
 0x17b   :  { %v792_v51 = vadd.f32 %v791_v33, %v251_v44 }
 0x17f   :  { %v795_v34 = vpop.f32.mrb[4].mxu1 }
 0x180   :  { %v797_v35 = vpop.f32.mrb[5].mxu1  ;;  %v796_v59 = vadd.f32 %v795_v34, %v247_v43 }
 0x181   :  { %v799_v36 = vpop.f32.mrb[6].mxu1  ;;  %v798_v62 = vadd.f32 %v797_v35, %v251_v44 }
 0x182   :  { %v801_v37 = vpop.f32.mrb[7].mxu1  ;;  %v800_v2 = vadd.f32 %v799_v36, %v247_v43 }
 0x183   :  { %v802_v6 = vadd.f32 %v801_v37, %v251_v44 }
 0x1c1   :  { %v944_v47 = vpop.f32.mrb[0].mxu0 }
 0x1c2   :  { %v1698_v49 = vadd.f32 %v944_v47, %v786_v45  ;;  %v946_v50 = vpop.f32.mrb[1].mxu0 }
 0x1c3   :  { %v1700_v52 = vadd.f32 %v946_v50, %v788_v46  ;;  %v948_v53 = vpop.f32.mrb[2].mxu0  ;;  %v1916_v50 = vld [vmem:[#allocation10 + $0x18] sm:$0xff]  }
 0x1c4   :  { %v1702_v54 = vadd.f32 %v948_v53, %v790_v48  ;;  %v950_v55 = vpop.f32.mrb[3].mxu0  ;;  %v963_v57 = vmax.f32 %v1698_v49, 0.0  ;;  %v1914_v48 = vld [vmem:[#allocation10 + $0x8] sm:$0xff]   ;;  %v1915_v49 = vld [vmem:[#allocation10 + $0x10] sm:$0xff]  }
 0x1c5   :  { %v1704_v56 = vadd.f32 %v950_v55, %v792_v51  ;;  %v964_v60 = vmax.f32 %v1700_v52, 0.0  ;;  %v1917_v51 = vld [vmem:[#allocation10 + $0x20] sm:$0xff]   ;;  %v1918_v52 = vld [vmem:[#allocation10 + $0x28] sm:$0xff]   ;;  %v1919_v53 = vld [vmem:[#allocation10 + $0x30] sm:$0xff]  }
 0x1c6   :  { %v965_v58 = vmax.f32 %v1702_v54, 0.0  ;;  %v1920_v54 = vld [vmem:[#allocation10 + $0x38] sm:$0xff]   ;;  %v1591_v55 = vld [vmem:[%s2245_s6] ss:$0 sm:$0xff] }
 0x1c7   :  { %v966_v61 = vmax.f32 %v1704_v56, 0.0 }
 0x1c8   :  { %v971_v63 = vpack.c.bf16 %v965_v58, %v963_v57 }
 0x1c9   :  { %v972_v0 = vpack.c.bf16 %v966_v61, %v964_v60  ;;  %v954_v1 = vpop.f32.mrb[4].mxu0 }
 0x1ca   :  { %v1706_v3 = vadd.f32 %v954_v1, %v796_v59  ;;  %v956_v4 = vpop.f32.mrb[5].mxu0 }
 0x1cb   :  { %v1708_v7 = vadd.f32 %v956_v4, %v798_v62  ;;  %v958_v8 = vpop.f32.mrb[6].mxu0  ;;  %1142 = vmatprep.mubr.bf16.mxu1 %v972_v0 }
 0x1cc   :  { %v1710_v9 = vadd.f32 %v958_v8, %v800_v2  ;;  %v960_v10 = vpop.f32.mrb[7].mxu0  ;;  %1143 = vmatmul.mubr.bf16.vlgmr.msra.gmra.mrb[8].mxu1 %v971_v63  ;;  %v967_v12 = vmax.f32 %v1706_v3, 0.0 }
 0x1cd   :  { %v1712_v11 = vadd.f32 %v960_v10, %v802_v6  ;;  %1658 = vmatpush3.bf16.msra.mxu1 %v1905_v29  ;;  %v968_v15 = vmax.f32 %v1708_v7, 0.0  ;;  %v1600_v6 = vld [vmem:[%s2247_s8] ss:$0 sm:$0xff] }
 0x1ce   :  { %v969_v13 = vmax.f32 %v1710_v9, 0.0  ;;  %1659 = vmatprep.subr.bf16.mxu1 %v1906_v5 }
 0x1cf   :  { %v970_v16 = vmax.f32 %v1712_v11, 0.0 }
 0x1d0   :  { %v973_v17 = vpack.c.bf16 %v969_v13, %v967_v12 }
 0x1d1   :  { %v974_v18 = vpack.c.bf16 %v970_v16, %v968_v15  ;;  %1660 = vmatpush3.bf16.msra.mxu1 %v1906_v5 }
 0x1d2   :  { %1661 = vmatprep.subr.bf16.mxu1 %v1907_v14 }
 0x1d3   :  { %1150 = vmatprep.mubr.bf16.mxu1 %v974_v18 }
 0x1d4   :  { %1151 = vmatmul.mubr.bf16.gmra.mrb[12].mxu1 %v973_v17 }
 0x1d5   :  { %1662 = vmatpush3.bf16.msra.mxu1 %v1907_v14 }
 0x1d6   :  { %1663 = vmatprep.subr.bf16.mxu1 %v1908_v19 }
 0x1d9   :  { %1664 = vmatpush3.bf16.msra.mxu1 %v1908_v19 }
 0x1da   :  { %1665 = vmatprep.subr.bf16.mxu1 %v1909_v20 }
 0x1dd   :  { %1666 = vmatpush3.bf16.msra.mxu1 %v1909_v20 }
 0x1de   :  { %1667 = vmatprep.subr.bf16.mxu1 %v1910_v21 }
 0x1e1   :  { %1668 = vmatpush3.bf16.msra.mxu1 %v1910_v21 }
 0x1e2   :  { %1669 = vmatprep.subr.bf16.mxu1 %v1911_v22 }
 0x1e5   :  { %1670 = vmatpush3.bf16.msra.mxu1 %v1911_v22 }
 0x1e6   :  { %1671 = vmatprep.subr.bf16.mxu1 %v1912_v23 }
 0x1e9   :  { %1672 = vmatpush3.bf16.msra.mxu1 %v1912_v23 }
 0x1ea   :  { %1677 = vmatprep.subr.bf16.mxu1 %v1913_v24 }
 0x29f   :  { %v1625_v25 = vpop.f32.mrb[8].mxu1 }
 0x2a0   :  { %v1626_v27 = vpop.f32.mrb[9].mxu1 }
 0x2a1   :  { %v1627_v28 = vadd.f32 %v1626_v27, %v1625_v25  ;;  %v1628_v29 = vpop.f32.mrb[10].mxu1 }
 0x2a2   :  { %v1629_v30 = vpop.f32.mrb[11].mxu1 }
 0x2a3   :  { %v1145_v31 = vadd.f32 %v1627_v28, %v1574_v26  ;;  %v1630_v32 = vadd.f32 %v1629_v30, %v1628_v29 }
 0x2a5   :  { %v1148_v33 = vadd.f32 %v1630_v32, %v1574_v26  ;;  %v1159_v34 = vmax.f32 %v1145_v31, 0.0 }
 0x2a7   :  { %v1160_v35 = vmax.f32 %v1148_v33, 0.0  ;;  %v1631_v36 = vpop.f32.mrb[12].mxu1 }
 0x2a8   :  { %v1632_v37 = vpop.f32.mrb[13].mxu1 }
 0x2a9   :  { %v1633_v38 = vadd.f32 %v1632_v37, %v1631_v36  ;;  %v1634_v39 = vpop.f32.mrb[14].mxu1  ;;  %v1163_v40 = vpack.c.bf16 %v1160_v35, %v1159_v34 }
 0x2aa   :  { %v1635_v41 = vpop.f32.mrb[15].mxu1 }
 0x2ab   :  { %v1153_v42 = vadd.f32 %v1633_v38, %v1574_v26  ;;  %v1636_v43 = vadd.f32 %v1635_v41, %v1634_v39  ;;  %1673 = vmatprep.mubr.bf16.mxu1 %v1163_v40 }
 0x2ad   :  { %v1156_v44 = vadd.f32 %v1636_v43, %v1574_v26  ;;  %v1161_v45 = vmax.f32 %v1153_v42, 0.0 }
 0x2af   :  { %v1162_v46 = vmax.f32 %v1156_v44, 0.0 }
 0x2b1   :  { %v1164_v47 = vpack.c.bf16 %v1162_v46, %v1161_v45 }
 0x2b3   :  { %1674 = vmatmul.mubr.bf16.vlgmr.msra.gmra.mrb[16].mxu1 %v1164_v47 }
 0x2b4   :  { %1678 = vmatpush3.bf16.msra.mxu1 %v1913_v24 }
 0x2b5   :  { %1679 = vmatprep.subr.bf16.mxu1 %v1914_v48 }
 0x2b8   :  { %1680 = vmatpush3.bf16.msra.mxu1 %v1914_v48 }
 0x2b9   :  { %1681 = vmatprep.subr.bf16.mxu1 %v1915_v49 }
 0x2bc   :  { %1682 = vmatpush3.bf16.msra.mxu1 %v1915_v49 }
 0x2bd   :  { %1683 = vmatprep.subr.bf16.mxu1 %v1916_v50 }
 0x2c0   :  { %1684 = vmatpush3.bf16.msra.mxu1 %v1916_v50 }
 0x2c1   :  { %1685 = vmatprep.subr.bf16.mxu1 %v1917_v51 }
 0x2c4   :  { %1686 = vmatpush3.bf16.msra.mxu1 %v1917_v51 }
 0x2c5   :  { %1687 = vmatprep.subr.bf16.mxu1 %v1918_v52 }
 0x2c8   :  { %1688 = vmatpush3.bf16.msra.mxu1 %v1918_v52 }
 0x2c9   :  { %1689 = vmatprep.subr.bf16.mxu1 %v1919_v53 }
 0x2cc   :  { %1690 = vmatpush3.bf16.msra.mxu1 %v1919_v53 }
 0x2cd   :  { %1691 = vmatprep.subr.bf16.mxu1 %v1920_v54 }
 0x2d0   :  { %1692 = vmatpush3.bf16.msra.mxu1 %v1920_v54 }
 0x386   :  { %v1675_v56 = vpop.f32.mrb[16].mxu1 }
 0x387   :  { %v1279_v57 = vadd.f32 %v1675_v56, %v1591_v55  ;;  %v1270_v58 = vpop.f32.mrb[17].mxu1 }
 0x388   :  { %v1271_v59 = vadd.f32 %v1591_v55, %v1270_v58  ;;  %v1676_v60 = vpop.f32.mrb[18].mxu1 }
 0x389   :  { %v1282_v61 = vadd.f32 %v1676_v60, %v1591_v55  ;;  %v1273_v62 = vpop.f32.mrb[19].mxu1  ;;  %v1287_v0 = vmax.f32 %v1279_v57, 0.0 }
 0x38a   :  { %v1274_v63 = vadd.f32 %v1591_v55, %v1273_v62  ;;  %v1285_v2 = vmax.f32 %v1271_v59, 0.0 }
 0x38b   :  { %v1288_v1 = vmax.f32 %v1282_v61, 0.0 }
 0x38c   :  { %v1286_v3 = vmax.f32 %v1274_v63, 0.0 }
 0x38d   :  { %v1290_v4 = vpack.c.bf16 %v1288_v1, %v1287_v0 }
 0x38e   :  { %v1289_v5 = vpack.c.bf16 %v1286_v3, %v1285_v2 }
 0x390   :  { %1693 = vmatprep.mubr.bf16.mxu1 %v1289_v5 }
 0x391   :  { %1694 = vmatmul.mubr.bf16.vlgmr.msra.gmra.mrb[20].mxu1 %v1290_v4 }
 0x464   :  { %v1695_v7 = vpop.f32.mrb[20].mxu1 }
 0x465   :  { %v1405_v8 = vadd.f32 %v1695_v7, %v1600_v6  ;;  %v1396_v9 = vpop.f32.mrb[21].mxu1 }
 0x466   :  { %v1397_v10 = vadd.f32 %v1600_v6, %v1396_v9  ;;  %v1696_v11 = vpop.f32.mrb[22].mxu1 }
 0x467   :  { %1415 = vmax.xlane.f32.xlu1 %v1405_v8  ;;  %v1399_v12 = vpop.f32.mrb[23].mxu1  ;;  %v1408_v13 = vadd.f32 %v1696_v11, %v1600_v6 }
 0x468   :  { %1411 = vmax.xlane.f32.xlu0 %v1397_v10  ;;  %v1400_v14 = vadd.f32 %v1600_v6, %v1399_v12 }
 0x46b   :  { %1417 = vmax.xlane.f32.xlu1 %v1408_v13 }
 0x46c   :  { %1413 = vmax.xlane.f32.xlu0 %v1400_v14 }
 0x4f4   :  { %v1416_v15 = vpop.xlane.xlu1 %1415 }
 0x4f5   :  { %v1421_v16 = vsub.f32 %v1405_v8, %v1416_v15  ;;  %v1412_v17 = vpop.xlane.xlu0 %1411 }
 0x4f6   :  { %v1419_v18 = vsub.f32 %v1397_v10, %v1412_v17 }
 0x4f7   :  { %v1427_v21 = vmul.f32 1.442695, %v1421_v16 }
 0x4f8   :  { %v1423_v19 = vmul.f32 1.442695, %v1419_v18  ;;  %v1418_v20 = vpop.xlane.xlu1 %1417 }
 0x4f9   :  { %v1414_v22 = vpop.xlane.xlu0 %1413  ;;  %v1422_v23 = vsub.f32 %v1408_v13, %v1418_v20 }
 0x4fa   :  { %1921 = vpow2.f32 %v1423_v19  ;;  %v1420_v24 = vsub.f32 %v1400_v14, %v1414_v22 }
 0x4fb   :  { %1923 = vpow2.f32 %v1427_v21  ;;  %v1429_v26 = vmul.f32 1.442695, %v1422_v23 }
 0x4fc   :  { %v1425_v25 = vmul.f32 1.442695, %v1420_v24 }
 0x4fe   :  { %1925 = vpow2.f32 %v1425_v25 }
 0x4ff   :  { %1927 = vpow2.f32 %v1429_v26 }
 0x504   :  { %v1922_v27 = vpop.eup %1921 }
 0x505   :  { %1431 = vadd.xlane.f32.xlu0 %v1922_v27  ;;  %v1924_v28 = vpop.eup %1923 }
 0x508   :  { %v1926_v29 = vpop.eup %1925 }
 0x509   :  { %1435 = vadd.xlane.f32.xlu0 %v1924_v28  ;;  %1433 = vadd.xlane.f32.xlu1 %v1926_v29  ;;  %v1928_v30 = vpop.eup %1927 }
 0x50d   :  { %1437 = vadd.xlane.f32.xlu1 %v1928_v30 }
 0x592   :  { %v1432_v31 = vpop.xlane.xlu0 %1431 }
 0x593   :  { %1929 = vlog2.f32 %v1432_v31 }
 0x596   :  { %v1434_v32 = vpop.xlane.xlu1 %1433  ;;  %v1436_v33 = vpop.xlane.xlu0 %1435 }
 0x597   :  { %1931 = vlog2.f32 %v1434_v32 }
 0x598   :  { %1933 = vlog2.f32 %v1436_v33 }
 0x59a   :  { %v1438_v34 = vpop.xlane.xlu1 %1437 }
 0x59b   :  { %1935 = vlog2.f32 %v1438_v34 }
 0x59d   :  { %v1930_v35 = vpop.eup %1929 }
 0x59e   :  { %v1440_v36 = vmul.f32 0.6931472, %v1930_v35 }
 0x5a0   :  { %v1447_v37 = vsub.f32 %v1419_v18, %v1440_v36 }
 0x5a1   :  { %v1932_v38 = vpop.eup %1931 }
 0x5a2   :  { %v1934_v39 = vpop.eup %1933  ;;  %1451 = vst [vmem:[#allocation11] sm:$0xff] %v1447_v37  ;;  %v1442_v40 = vmul.f32 0.6931472, %v1932_v38 }
 0x5a3   :  { %v1444_v41 = vmul.f32 0.6931472, %v1934_v39 }
 0x5a4   :  { %v1448_v42 = vsub.f32 %v1420_v24, %v1442_v40 }
 0x5a5   :  { %v1936_v43 = vpop.eup %1935  ;;  %v1449_v44 = vsub.f32 %v1421_v16, %v1444_v41 }
 0x5a6   :  { %1452 = vst [vmem:[#allocation11 + $0x8] sm:$0xff] %v1448_v42  ;;  %v1446_v45 = vmul.f32 0.6931472, %v1936_v43 }
 0x5a7   :  { %1453 = vst [vmem:[#allocation11 + $0x10] sm:$0xff] %v1449_v44 }
 0x5a8   :  { %v1450_v46 = vsub.f32 %v1422_v23, %v1446_v45 }
 0x5aa   :  { %1454 = vst [vmem:[#allocation11 + $0x18] sm:$0xff] %v1450_v46 }
 0x5ab   :  { %1459 = vsyncadd [#allocation4], 128  ;;  %s2089_s6 = smov [#allocation11]  }
 0x5ac   :  { %s1460_s8 = sshll.u32 %s2089_s6, 4  ;;  %s1461_s8 = int_to_ptr.vmem [resolvable:$true] %s1460_s8 }
 0x5ad   :  { %s2047_s18 = scalar_lea.vmem %s1461_s8, 384  ;;  %s2051_s21 = scalar_lea.vmem %s1461_s8, 512 }
 0x5ae   :  { %p2048_p12 = scmp.ne.s32.totalorder %s1461_s8, %s2047_s18  ;;  %p2052_p13 = scmp.lt.s32.totalorder %s1461_s8, %s1461_s8 }
 0x5af   :  { %p2053_p0 = scmp.lt.s32.totalorder %s2051_s21, %s2047_s18 }
 0x5b1   :  { %p2054_p1 = por %p2053_p0, %p2052_p13 }
 0x5b3   :  { %p2055_p2 = pnand %p2054_p1, %p2048_p12 }
 0x5b5   :  { %2058 = shalt.err (!%p2055_p2)
}
 0x5b6   :  { %s2059_s25 = scalar_lea.hbm %s2248_s9, 384 }
 0x5b7   :  { %p2060_p3 = scmp.ne.s32.totalorder %s2248_s9, %s2059_s25  ;;  %p2063_p4 = scmp.lt.u32.totalorder %s2059_s25, %s2248_s9 }
 0x5b9   :  { %p2065_p5 = pnand %p2063_p4, %p2060_p3 }
 0x5bb   :  { %2068 = shalt.err (!%p2065_p5)
}
 0x5bc   :  { %1466 = dma.vmem_to_hbm [thread:$0]  %s1461_s8, 384, %s2248_s9, [#allocation4], %s2078_s19, %s2078_s19, %s2079_s20  }
 0x5bd   :  { %2075 = dma.done.wait [#allocation4], 512  }
 0x5be   :  { %2076 = vsyncadd [#allocation4], 4294966784 }
 0x5bf   :  { %1470 = vsyncpa [#allocation3], 1 }
 0x5c0   :  { %1471 = vsyncpa [#allocation6], 1 }
 0x5c1   :  { %1472 = vsyncpa [#allocation9], 1 }
 0x5c2   :  { %1473 = vsyncpa [#allocation4], 1 }

</bundles_post_ra>
